<compile_context>
chip_gen: v7x
topology: tpu7x:2x2x1
jax: 0.10.0
libtpu: 0.0.40
codegen_flags: <defaults>
</compile_context>

<pallas_src>
import jax
import jax.numpy as jnp
from jax.experimental import pallas as pl
from jax.experimental.pallas import tpu as pltpu


def _round_up8(n: int) -> int:
    return -(-n // 8) * 8


def _slab_layout(state_dim: int, action_dim: int, hidden_dim: int):
    """Row offsets of each parameter section inside the packed weight slab.

    Every section starts on a multiple-of-8 row so static slices stay
    sublane-aligned. Slab column width = 2 * hidden_dim (fused twin width).
    """
    h2 = 2 * hidden_dim
    rows = {}
    r = 0
    for name, n in (
        ("w1s", state_dim),   # layer-1 weights hit by `states`
        ("w1a", action_dim),  # layer-1 weights hit by `actions`
        ("w2", h2),           # block-diagonal fused layer 2
        ("w3", h2),           # column-packed fused layer 3 (cols 0..1 used)
        ("b1", 1),
        ("b2", 1),
        ("b3", 1),            # cols 0..1 used
    ):
        rows[name] = r
        r += _round_up8(n)
    return rows, r, h2


def pack_params(params, state_dim: int, action_dim: int, hidden_dim: int):
    """Fuse + pack the 12 per-net parameter arrays into one [R, 2H] f32 slab."""
    rows, total_rows, h2 = _slab_layout(state_dim, action_dim, hidden_dim)
    hd = hidden_dim
    q1, q2 = params["q1"], params["q2"]

    slab = jnp.zeros((total_rows, h2), jnp.float32)

    # Layer 1: [in_dim, 2H], split into the rows multiplied by states / actions.
    w1f = jnp.concatenate([q1["w1"], q2["w1"]], axis=1)
    slab = slab.at[rows["w1s"]:rows["w1s"] + state_dim, :].set(w1f[:state_dim])
    slab = slab.at[rows["w1a"]:rows["w1a"] + action_dim, :].set(w1f[state_dim:])

    # Layer 2: block-diagonal [2H, 2H].
    w2f = (jnp.zeros((h2, h2), jnp.float32)
           .at[:hd, :hd].set(q1["w2"])
           .at[hd:, hd:].set(q2["w2"]))
    slab = slab.at[rows["w2"]:rows["w2"] + h2, :].set(w2f)

    # Layer 3: [2H, 2] zero-padded to [2H, 2H]; col 0 -> q1, col 1 -> q2.
    w3f = (jnp.zeros((h2, h2), jnp.float32)
           .at[:hd, 0:1].set(q1["w3"])
           .at[hd:, 1:2].set(q2["w3"]))
    slab = slab.at[rows["w3"]:rows["w3"] + h2, :].set(w3f)

    # Biases (row-padded to 8; only row 0 of each section is used).
    b1f = jnp.concatenate([q1["b1"], q2["b1"]], axis=1)[0]
    b2f = jnp.concatenate([q1["b2"], q2["b2"]], axis=1)[0]
    b3f = (jnp.zeros((h2,), jnp.float32)
           .at[0].set(q1["b3"][0, 0])
           .at[1].set(q2["b3"][0, 0]))
    slab = slab.at[rows["b1"]].set(b1f)
    slab = slab.at[rows["b2"]].set(b2f)
    slab = slab.at[rows["b3"]].set(b3f)
    return slab, rows


def _make_twin_q_kernel(state_dim: int, action_dim: int, hidden_dim: int, rows):
    h2 = 2 * hidden_dim
    r_w1s, r_w1a = rows["w1s"], rows["w1a"]
    r_w2, r_w3 = rows["w2"], rows["w3"]
    r_b1, r_b2, r_b3 = rows["b1"], rows["b2"], rows["b3"]

    def kernel(s_ref, a_ref, w_ref, q_ref):
        # Static, sublane-aligned views into the packed parameter slab.
        w1s = w_ref[r_w1s:r_w1s + state_dim, :]
        w1a = w_ref[r_w1a:r_w1a + action_dim, :]
        w2 = w_ref[r_w2:r_w2 + h2, :]
        w3 = w_ref[r_w3:r_w3 + h2, :]
        b1 = w_ref[r_b1:r_b1 + 1, :]
        b2 = w_ref[r_b2:r_b2 + 1, :]
        b3 = w_ref[r_b3:r_b3 + 1, :]

        # Layer 1: x @ W1 without materializing concat([states, actions]).
        h = (jnp.dot(s_ref[...], w1s, preferred_element_type=jnp.float32)
             + jnp.dot(a_ref[...], w1a, preferred_element_type=jnp.float32)
             + b1)
        h = jnp.maximum(h, 0.0)
        # Layer 2: fused block-diagonal twin layer.
        h = jnp.dot(h, w2, preferred_element_type=jnp.float32) + b2
        h = jnp.maximum(h, 0.0)
        # Layer 3: produces q1 in column 0, q2 in column 1.
        q = jnp.dot(h, w3, preferred_element_type=jnp.float32) + b3
        q_ref[...] = q[:, :2]

    return kernel


def twin_q_forward(states, actions, params):
    """Returns (q1, q2), each [B, 1]. params: dict q1/q2 of (in,out) weights."""
    B, state_dim = states.shape
    action_dim = actions.shape[1]
    hidden_dim = params["q1"]["w1"].shape[1]

    # Pack once per call here for simplicity; in a training loop this packing
    # would be hoisted and reused across steps.
    slab, rows = pack_params(params, state_dim, action_dim, hidden_dim)
    slab_rows, slab_cols = slab.shape

    kernel = _make_twin_q_kernel(state_dim, action_dim, hidden_dim, rows)

    # Batch tiling: one tile when small, 512-row tiles for real RL batches.
    tile_b = B if B <= 512 else 512
    grid = (pl.cdiv(B, tile_b),)

    q = pl.pallas_call(
        kernel,
        out_shape=jax.ShapeDtypeStruct((B, 2), jnp.float32),
        grid=grid,
        in_specs=[
            pl.BlockSpec((tile_b, state_dim), lambda i: (i, 0)),
            pl.BlockSpec((tile_b, action_dim), lambda i: (i, 0)),
            # Weight slab: same block every step -> stays VMEM-resident.
            pl.BlockSpec((slab_rows, slab_cols), lambda i: (0, 0)),
        ],
        out_specs=pl.BlockSpec((tile_b, 2), lambda i: (i, 0)),
        compiler_params=pltpu.CompilerParams(
            dimension_semantics=("parallel",)),
    )(states, actions, slab)

    return q[:, 0:1], q[:, 1:2]


def init_params(key, state_dim, action_dim, hidden_dim):
    """Deterministic init mimicking nn.Linear default (uniform +/- 1/sqrt(fan_in)).

    Weights stored as (in_features, out_features); biases as (1, out_features).
    """
    in_dim = state_dim + action_dim

    def linear(key, fan_in, fan_out):
        kw, kb = jax.random.split(key)
        bound = 1.0 / jnp.sqrt(fan_in)
        w = jax.random.uniform(kw, (fan_in, fan_out), jnp.float32, -bound, bound)
        b = jax.random.uniform(kb, (1, fan_out), jnp.float32, -bound, bound)
        return w, b

    keys = jax.random.split(key, 6)
    p = {}
    for name, ks in (("q1", keys[:3]), ("q2", keys[3:])):
        w1, b1 = linear(ks[0], in_dim, hidden_dim)
        w2, b2 = linear(ks[1], hidden_dim, hidden_dim)
        w3, b3 = linear(ks[2], hidden_dim, 1)
        p[name] = {"w1": w1, "b1": b1, "w2": w2, "b2": b2, "w3": w3, "b3": b3}
    return p


def _reference(states, actions, params):
    x = jnp.concatenate([states, actions], axis=1)

    def mlp(p):
        h = jnp.maximum(x @ p["w1"] + p["b1"], 0.0)
        h = jnp.maximum(h @ p["w2"] + p["b2"], 0.0)
        return h @ p["w3"] + p["b3"]

    return mlp(params["q1"]), mlp(params["q2"])


if __name__ == "__main__":
    B, STATE_DIM, ACTION_DIM, HIDDEN_DIM = 8, 16, 8, 32

    key = jax.random.PRNGKey(0)
    k_s, k_a, k_p = jax.random.split(key, 3)
    states = jax.random.normal(k_s, (B, STATE_DIM), jnp.float32)
    actions = jax.random.normal(k_a, (B, ACTION_DIM), jnp.float32)
    params = init_params(k_p, STATE_DIM, ACTION_DIM, HIDDEN_DIM)

    q1, q2 = twin_q_forward(states, actions, params)
    jax.block_until_ready((q1, q2))

    # Sanity check against a pure-JAX reference.
    r1, r2 = _reference(states, actions, params)
    assert q1.shape == (B, 1) and q2.shape == (B, 1)
    assert jnp.allclose(q1, r1, atol=1e-5) and jnp.allclose(q2, r2, atol=1e-5)

    print("KERNEL_OK")
</pallas_src>

<mosaic_0001>
module attributes {stable_mosaic.version = 11 : i64} {
  func.func @kernel(%arg0: i32, %arg1: memref<8x16xf32, #tpu.memory_space<vmem>>, %arg2: memref<8x8xf32, #tpu.memory_space<vmem>>, %arg3: memref<176x64xf32, #tpu.memory_space<vmem>>, %arg4: memref<8x2xf32, #tpu.memory_space<vmem>>) attributes {dimension_semantics = [#tpu.dimension_semantics<parallel>], iteration_bounds = array<i64: 1>, scalar_prefetch = 0 : i64, scratch_operands = 0 : i64, tpu.core_type = #tpu.core_type<tc>, window_params = [{transform_indices = @transform_0, window_bounds = array<i64: 8, 16>}, {transform_indices = @transform_1, window_bounds = array<i64: 8, 8>}, {pipeline_mode = #tpu.pipeline_mode<synchronous>, transform_indices = @transform_2, window_bounds = array<i64: 176, 64>}, {transform_indices = @transform_3, window_bounds = array<i64: 8, 2>}]} {
    %c0 = arith.constant 0 : index
    %c0_0 = arith.constant 0 : index
    %0 = vector.load %arg3[%c0, %c0_0] : memref<176x64xf32, #tpu.memory_space<vmem>>, vector<16x64xf32>
    %c16 = arith.constant 16 : index
    %c0_1 = arith.constant 0 : index
    %1 = vector.load %arg3[%c16, %c0_1] : memref<176x64xf32, #tpu.memory_space<vmem>>, vector<8x64xf32>
    %c24 = arith.constant 24 : index
    %c0_2 = arith.constant 0 : index
    %2 = vector.load %arg3[%c24, %c0_2] : memref<176x64xf32, #tpu.memory_space<vmem>>, vector<64x64xf32>
    %c88 = arith.constant 88 : index
    %c0_3 = arith.constant 0 : index
    %3 = vector.load %arg3[%c88, %c0_3] : memref<176x64xf32, #tpu.memory_space<vmem>>, vector<64x64xf32>
    %c152 = arith.constant 152 : index
    %c0_4 = arith.constant 0 : index
    %4 = vector.load %arg3[%c152, %c0_4] : memref<176x64xf32, #tpu.memory_space<vmem>>, vector<1x64xf32>
    %c160 = arith.constant 160 : index
    %c0_5 = arith.constant 0 : index
    %5 = vector.load %arg3[%c160, %c0_5] : memref<176x64xf32, #tpu.memory_space<vmem>>, vector<1x64xf32>
    %c168 = arith.constant 168 : index
    %c0_6 = arith.constant 0 : index
    %6 = vector.load %arg3[%c168, %c0_6] : memref<176x64xf32, #tpu.memory_space<vmem>>, vector<1x64xf32>
    %c0_7 = arith.constant 0 : index
    %c0_8 = arith.constant 0 : index
    %7 = vector.load %arg1[%c0_7, %c0_8] : memref<8x16xf32, #tpu.memory_space<vmem>>, vector<8x16xf32>
    %cst = arith.constant dense<0.000000e+00> : vector<8x64xf32>
    %8 = tpu.matmul %7, %0, %cst {dimension_numbers = #tpu.dot_dimension_numbers<[1], [0], [0], [1], [0, 0, 1, 1], [], []>} : vector<8x16xf32>, vector<16x64xf32>, vector<8x64xf32> -> vector<8x64xf32>
    %c0_9 = arith.constant 0 : index
    %c0_10 = arith.constant 0 : index
    %9 = vector.load %arg2[%c0_9, %c0_10] : memref<8x8xf32, #tpu.memory_space<vmem>>, vector<8x8xf32>
    %cst_11 = arith.constant dense<0.000000e+00> : vector<8x64xf32>
    %10 = tpu.matmul %9, %1, %cst_11 {dimension_numbers = #tpu.dot_dimension_numbers<[1], [0], [0], [1], [0, 0, 1, 1], [], []>} : vector<8x8xf32>, vector<8x64xf32>, vector<8x64xf32> -> vector<8x64xf32>
    %11 = arith.addf %8, %10 : vector<8x64xf32>
    %12 = vector.broadcast %4 : vector<1x64xf32> to vector<8x64xf32>
    %13 = arith.addf %11, %12 : vector<8x64xf32>
    %cst_12 = arith.constant 0.000000e+00 : f32
    %14 = vector.broadcast %cst_12 : f32 to vector<8x64xf32>
    %15 = arith.maximumf %13, %14 : vector<8x64xf32>
    %cst_13 = arith.constant dense<0.000000e+00> : vector<8x64xf32>
    %16 = tpu.matmul %15, %2, %cst_13 {dimension_numbers = #tpu.dot_dimension_numbers<[1], [0], [0], [1], [0, 0, 1, 1], [], []>} : vector<8x64xf32>, vector<64x64xf32>, vector<8x64xf32> -> vector<8x64xf32>
    %17 = vector.broadcast %5 : vector<1x64xf32> to vector<8x64xf32>
    %18 = arith.addf %16, %17 : vector<8x64xf32>
    %cst_14 = arith.constant 0.000000e+00 : f32
    %19 = vector.broadcast %cst_14 : f32 to vector<8x64xf32>
    %20 = arith.maximumf %18, %19 : vector<8x64xf32>
    %cst_15 = arith.constant dense<0.000000e+00> : vector<8x64xf32>
    %21 = tpu.matmul %20, %3, %cst_15 {dimension_numbers = #tpu.dot_dimension_numbers<[1], [0], [0], [1], [0, 0, 1, 1], [], []>} : vector<8x64xf32>, vector<64x64xf32>, vector<8x64xf32> -> vector<8x64xf32>
    %22 = vector.broadcast %6 : vector<1x64xf32> to vector<8x64xf32>
    %23 = arith.addf %21, %22 : vector<8x64xf32>
    %24 = vector.extract_strided_slice %23 {offsets = [0, 0], sizes = [8, 2], strides = [1, 1]} : vector<8x64xf32> to vector<8x2xf32>
    %c0_16 = arith.constant 0 : index
    %c0_17 = arith.constant 0 : index
    %25 = vector.load %arg4[%c0_16, %c0_17] : memref<8x2xf32, #tpu.memory_space<vmem>>, vector<8x2xf32>
    tpu.vector_store %arg4[%c0_16, %c0_17], %24 {strides = array<i32>} : memref<8x2xf32, #tpu.memory_space<vmem>>, vector<8x2xf32>,
    return
  }
  func.func @transform_0(%arg0: i32) -> (i32, i32) {
    %c0_i32 = arith.constant 0 : i32
    %c0_i32_0 = arith.constant 0 : i32
    return %arg0, %c0_i32 : i32, i32
  }
  func.func @transform_1(%arg0: i32) -> (i32, i32) {
    %c0_i32 = arith.constant 0 : i32
    %c0_i32_0 = arith.constant 0 : i32
    return %arg0, %c0_i32 : i32, i32
  }
  func.func @transform_2(%arg0: i32) -> (i32, i32) {
    %c0_i32 = arith.constant 0 : i32
    %c0_i32_0 = arith.constant 0 : i32
    %c0_i32_1 = arith.constant 0 : i32
    return %c0_i32, %c0_i32_0 : i32, i32
  }
  func.func @transform_3(%arg0: i32) -> (i32, i32) {
    %c0_i32 = arith.constant 0 : i32
    %c0_i32_0 = arith.constant 0 : i32
    return %arg0, %c0_i32 : i32, i32
  }
}

</mosaic_0001>

<bundles_post_ra>
// kernel: tpu_custom_call.1
= control target key start
LH: loop header
LB: loop body
LE: loop exit
PB: predicated region body
PF: predicated region fallthrough
CT: control target
= control target key end

     0   :  { %vm38_vm0 = vcmask 64512   ;;  %v464_v0 = vmov 0.0|0.0   ;;  %v465_v1 = vmov 0.0   ;;  %vm466_vm1 = vmmov 0   ;;  %s566_s2 = inlined_call_operand.vmem [shape: f32[176,64], index: 2, kind: input, shape index: {}]   ;;  %s567_s1 = inlined_call_operand.vmem [shape: f32[8,8], index: 1, kind: input, shape index: {}]   ;;  %s568_s0 = inlined_call_operand.vmem [shape: f32[8,16], index: 0, kind: input, shape index: {}]   ;;  %s569_s3 = inlined_call_operand.vmem [shape: f32[8,2], index: 3, kind: output, shape index: {}]  }
   0x1   :  { %434 = vmatprep.subr.bf16.mxu1 %v464_v0  ;;  %384 = vmatprep.subr.mxu0 %v465_v1  ;;  %v14_v2 = vld [vmem:[%s566_s2] sm:$0xff]  ;;  %v15_v3 = vld [vmem:[%s566_s2 + $0x8] sm:$0xff]  ;;  %v16_v4 = vld [vmem:[%s566_s2 + $0x10] sm:$0xff]  ;;  %vm112_vm2 = vcmask 130048   ;;  %vm196_vm3 = vcmask 523264   ;;  %vm348_vm4 = vcmask 15360  }
   0x2   :  { %v435_v5 = vpack.c.bf16 %v15_v3, %v14_v2  ;;  %385 = vmatpush3.msra.mxu0 %v16_v4  ;;  %386 = vmatprep.mubr.msk.f32.mxu0 %vm466_vm1, %v465_v1  ;;  %v37_v6 = vld [vmem:[%s567_s1] sm:$0xff]  ;;  %v17_v7 = vld [vmem:[%s566_s2 + $0x18] sm:$0xff]  ;;  %v19_v9 = vld [vmem:[%s566_s2 + $0x28] sm:$0xff] }
   0x3   :  { %387 = vmatmul.mubr.msk.f32.vlgmr.msra.gmra.mrb[0].mxu0 %vm38_vm0, %v37_v6  ;;  %393 = vmatprep.mubr.msk.f32.mxu1 %vm466_vm1, %v465_v1  ;;  %v18_v8 = vld [vmem:[%s566_s2 + $0x20] sm:$0xff]  ;;  %v20_v10 = vld [vmem:[%s566_s2 + $0x30] sm:$0xff]  ;;  %v21_v14 = vld [vmem:[%s566_s2 + $0x38] sm:$0xff] }
   0x4   :  { %436 = vmatpush3.bf16.msra.mxu1 %v435_v5  ;;  %v36_v11 = vld [vmem:[%s568_s0] sm:$0xff]  ;;  %437 = vmatprep.subr.bf16.mxu0 %v464_v0  ;;  %v438_v12 = vpack.c.bf16 %v18_v8, %v17_v7  ;;  %v441_v13 = vpack.c.bf16 %v20_v10, %v19_v9  ;;  %v23_v17 = vld [vmem:[%s566_s2 + $0x48] sm:$0xff]  ;;  %v24_v18 = vld [vmem:[%s566_s2 + $0x50] sm:$0xff] }
   0x5   :  { %412 = vmatprep.mubr.msk.f32.mxu0 %vm466_vm1, %v465_v1  ;;  %449 = vmatprep.subr.bf16.mxu1 %v464_v0  ;;  %v22_v15 = vld [vmem:[%s566_s2 + $0x40] sm:$0xff]  ;;  %v447_v19 = vpack.c.bf16 %v24_v18, %v23_v17  ;;  %v25_v20 = vld [vmem:[%s566_s2 + $0x58] sm:$0xff]  ;;  %v27_v22 = vld [vmem:[%s566_s2 + $0x68] sm:$0xff] }
   0x6   :  { %439 = vmatpush3.bf16.msra.mxu0 %v438_v12  ;;  %v444_v16 = vpack.c.bf16 %v22_v15, %v21_v14  ;;  %v26_v21 = vld [vmem:[%s566_s2 + $0x60] sm:$0xff]  ;;  %v28_v24 = vld [vmem:[%s566_s2 + $0x70] sm:$0xff]  ;;  %v29_v26 = vld [vmem:[%s566_s2 + $0x78] sm:$0xff] }
   0x7   :  { %394 = vmatmul.mubr.msk.f32.vlgmr.msra.gmra.mrb[0].mxu1 %vm112_vm2, %v36_v11  ;;  %440 = vmatprep.subr.bf16.mxu0 %v464_v0  ;;  %v450_v23 = vpack.c.bf16 %v26_v21, %v25_v20  ;;  %v453_v25 = vpack.c.bf16 %v28_v24, %v27_v22  ;;  %v30_v27 = vld [vmem:[%s566_s2 + $0x80] sm:$0xff]  ;;  %v356_v31 = vld [vmem:[%s566_s2 + $0x98] ss:$0 sm:$0xff]  ;;  %v31_v37 = vld [vmem:[%s566_s2 + $0x88] sm:$0xff] }
   0x8   :  { %431 = vmatprep.mubr.msk.f32.mxu1 %vm466_vm1, %v465_v1  ;;  %v456_v28 = vpack.c.bf16 %v30_v27, %v29_v26  ;;  %v32_v38 = vld [vmem:[%s566_s2 + $0x90] sm:$0xff]  ;;  %v357_v40 = vld [vmem:[%s566_s2 + $0xa0] ss:$0 sm:$0xff]  ;;  %v359_v45 = vld [vmem:[%s566_s2 + $0xa8] ss:$0 sm:$0xff] }
   0x9   :  { %451 = vmatpush3.bf16.msra.mxu1 %v450_v23  ;;  %v459_v39 = vpack.c.bf16 %v32_v38, %v31_v37 }
   0xa   :  { %442 = vmatpush3.bf16.msra.mxu0 %v441_v13  ;;  %452 = vmatprep.subr.bf16.mxu1 %v464_v0 }
   0xb   :  { %443 = vmatprep.subr.bf16.mxu0 %v464_v0 }
   0xd   :  { %454 = vmatpush3.bf16.msra.mxu1 %v453_v25 }
   0xe   :  { %445 = vmatpush3.bf16.msra.mxu0 %v444_v16  ;;  %455 = vmatprep.subr.bf16.mxu1 %v464_v0 }
   0xf   :  { %446 = vmatprep.subr.bf16.mxu0 %v464_v0 }
  0x11   :  { %457 = vmatpush3.bf16.msra.mxu1 %v456_v28 }
  0x12   :  { %448 = vmatpush3.bf16.msra.mxu0 %v447_v19  ;;  %458 = vmatprep.subr.bf16.mxu1 %v464_v0 }
  0x15   :  { %460 = vmatpush3.bf16.msra.mxu1 %v459_v39 }
  0xd6   :  { %v108_v29 = vpop.f32.mrb[0].mxu0 }
  0xd7   :  { %v388_v30 = vpop.f32.mrb[1].mxu0 }
  0xda   :  { %v182_v32 = vpop.f32.mrb[0].mxu1 }
  0xdb   :  { %v183_v33 = vadd.f32 %v182_v32, %v108_v29  ;;  %v395_v34 = vpop.f32.mrb[1].mxu1 }
  0xdd   :  { %v190_v35 = vadd.f32 %v356_v31, %v183_v33 }
  0xdf   :  { %v191_v36 = vmax.f32 %v190_v35, 0.0 }
  0xe1   :  { %413 = vmatmul.mubr.msk.f32.vlgmr.msra.gmra.mrb[2].mxu0 %vm196_vm3, %v191_v36 }
 0x1b4   :  { %v266_v41 = vpop.f32.mrb[2].mxu0 }
 0x1b5   :  { %v267_v42 = vadd.f32 %v357_v40, %v266_v41  ;;  %v414_v43 = vpop.f32.mrb[3].mxu0 }
 0x1b7   :  { %v270_v44 = vmax.f32 %v267_v42, 0.0 }
 0x1b9   :  { %432 = vmatmul.mubr.msk.f32.vlgmr.msra.gmra.mrb[2].mxu1 %vm196_vm3, %v270_v44 }
 0x28c   :  { %v344_v46 = vpop.f32.mrb[2].mxu1 }
 0x28d   :  { %v345_v47 = vadd.f32 %v359_v45, %v344_v46  ;;  %v433_v48 = vpop.f32.mrb[3].mxu1 }
 0x28f   :  { %349 = vst.msk [vmem:[%s569_s3] sm:$0xff] %vm348_vm4, %v345_v47 }

</bundles_post_ra>
